<compile_context>
chip_gen: v6e
topology: v6e:2x2x1
jax: 0.10.0
libtpu: 0.0.40
codegen_flags: <defaults>
</compile_context>

<pallas_src>
import functools

import jax
import jax.numpy as jnp
from jax.experimental import pallas as pl
from jax.experimental.pallas import tpu as pltpu

LANE = 128   # vreg lane width
SUB = 8      # vreg sublane width


def _round_up(x, m):
    return ((x + m - 1) // m) * m


def _bf16_eltwise_supported():
    """bf16 VPU/EUP exists on v6e/v7x; v5e and earlier must keep tanh in f32."""
    try:
        kind = jax.devices()[0].device_kind.lower()
    except Exception:
        return False
    if any(tag in kind for tag in ("v2", "v3", "v4", "v5")):
        return False
    return any(tag in kind for tag in ("v6", "v7", "7x"))


def vnet_kernel(x_ref, w1_ref, w2_ref, misc_ref, o_ref, *, bf16_tanh):
    """One batch tile of the value network.

    x_ref   : (tb, K)         bf16 activation tile (streamed over the grid)
    w1_ref  : (K, h_pad)      bf16, VMEM-resident
    w2_ref  : (h_pad, h_pad)  bf16, VMEM-resident
    misc_ref: (4, h_pad)      f32: row0=b1, row1=b2, row2=w3 row, row3[0]=b3
    o_ref   : (tb, 1)         f32 value output tile
    """
    x = x_ref[...]
    b1 = misc_ref[0:1, :]
    b2 = misc_ref[1:2, :]
    w3_row = misc_ref[2:3, :]
    b3 = misc_ref[3:4, 0:1]

    # Layer 1: bf16 MXU dot, f32 accumulate, f32 bias add.
    z1 = jnp.dot(x, w1_ref[...], preferred_element_type=jnp.float32) + b1
    if bf16_tanh:
        h1 = jnp.tanh(z1.astype(jnp.bfloat16))        # bf16 EUP (v6e/v7x)
    else:
        h1 = jnp.tanh(z1).astype(jnp.bfloat16)        # f32 EUP (v5e and older)

    # Layer 2.
    z2 = jnp.dot(h1, w2_ref[...], preferred_element_type=jnp.float32) + b2
    if bf16_tanh:
        h2 = jnp.tanh(z2.astype(jnp.bfloat16)).astype(jnp.float32)
    else:
        h2 = jnp.tanh(z2)

    # Final layer H -> 1: lane-reduce (XLU) instead of a 1-column MXU matmul.
    v = jnp.sum(h2 * w3_row, axis=-1, keepdims=True) + b3
    o_ref[...] = v.astype(o_ref.dtype)


def pack_params(w1, b1, w2, b2, w3, b3):
    """Lane-pad hdim to 128 and return (w1_bf16, w2_bf16, misc_f32).

    w1: (K, H), b1: (1, H), w2: (H, H), b2: (1, H), w3: (H, 1), b3: (1, 1).
    Padded hdim lanes are zero (tanh(0)=0, zero w3 lanes), so padding never
    affects the output.  The contraction dim K of layer 1 is NOT padded -- the
    activation stream keeps its natural width.
    """
    K, H = w1.shape
    h_pad = _round_up(H, LANE)

    w1p = jnp.zeros((K, h_pad), jnp.float32).at[:, :H].set(w1).astype(jnp.bfloat16)
    w2p = jnp.zeros((h_pad, h_pad), jnp.float32).at[:H, :H].set(w2).astype(jnp.bfloat16)

    misc = jnp.zeros((4, h_pad), jnp.float32)
    misc = misc.at[0, :H].set(b1.reshape(-1))
    misc = misc.at[1, :H].set(b2.reshape(-1))
    misc = misc.at[2, :H].set(w3.reshape(-1))
    misc = misc.at[3, 0].set(b3.reshape(-1)[0])
    return w1p, w2p, misc


def vnetwork_forward(states, w1p, w2p, misc, *, block_b=2048):
    """states: (B, num_states) -> (B, 1) f32.

    For repeated calls, pass `states` already in bf16 so the wrapper cast
    (one extra HBM pass) disappears and the kernel streams 2 bytes/element.
    """
    B, K = states.shape
    assert w1p.shape[0] == K, (w1p.shape, K)
    h_pad = w1p.shape[1]

    xs = states.astype(jnp.bfloat16)   # no-op if caller already supplies bf16

    # Batch tile: big enough to amortize the ~0.35us/step grid overhead, small
    # enough that (a) moderate B still gives >=2 grid steps for v7x megacore
    # sharding and (b) the f32 (tb, h_pad) temporaries stay tiny vs the 32 MiB
    # scoped VMEM (v7x: 64 MiB physical per TC).
    if B <= SUB:
        tb = _round_up(max(B, 1), SUB)
    else:
        tb = max(SUB, min(block_b, _round_up((B + 1) // 2, SUB)))
    grid_b = pl.cdiv(B, tb)

    kernel = functools.partial(vnet_kernel, bf16_tanh=_bf16_eltwise_supported())

    out = pl.pallas_call(
        kernel,
        out_shape=jax.ShapeDtypeStruct((B, 1), jnp.float32),
        grid_spec=pltpu.PrefetchScalarGridSpec(
            num_scalar_prefetch=0,
            grid=(grid_b,),
            in_specs=[
                # Activations: streamed per batch tile, double-buffered by
                # Pallas.  Last block dim == full array dim K (no lane pad).
                pl.BlockSpec((tb, K), lambda i: (i, 0)),
                # Weights / biases: constant index_map -> VMEM-resident.
                pl.BlockSpec((K, h_pad), lambda i: (0, 0)),
                pl.BlockSpec((h_pad, h_pad), lambda i: (0, 0)),
                pl.BlockSpec((4, h_pad), lambda i: (0, 0)),
            ],
            out_specs=pl.BlockSpec((tb, 1), lambda i: (i, 0)),
        ),
        compiler_params=pltpu.CompilerParams(
            dimension_semantics=("parallel",),     # shards batch across TCs (v7x)
            vmem_limit_bytes=32 * 1024 * 1024,     # safe everywhere incl. v7x
        ),
    )(xs, w1p, w2p, misc)
    return out


def init_params(key, num_states, hdim=100):
    """Deterministic init mimicking torch.nn.Linear (uniform +-1/sqrt(fan_in)).

    Weights are returned already transposed to (in, out)."""
    keys = jax.random.split(key, 6)

    def linear(kw, kb, fan_in, fan_out):
        bound = 1.0 / jnp.sqrt(jnp.float32(fan_in))
        w = jax.random.uniform(kw, (fan_in, fan_out), jnp.float32, -bound, bound)
        b = jax.random.uniform(kb, (1, fan_out), jnp.float32, -bound, bound)
        return w, b

    w1, b1 = linear(keys[0], keys[1], num_states, hdim)
    w2, b2 = linear(keys[2], keys[3], hdim, hdim)
    w3, b3 = linear(keys[4], keys[5], hdim, 1)
    return w1, b1, w2, b2, w3, b3


def vnetwork_ref(states, w1, b1, w2, b2, w3, b3):
    x = jnp.tanh(states @ w1 + b1)
    x = jnp.tanh(x @ w2 + b2)
    return x @ w3 + b3


if __name__ == "__main__":
    num_states = 32
    batch = 8

    key = jax.random.PRNGKey(0)
    k_x, k_p = jax.random.split(key)
    states = jax.random.normal(k_x, (batch, num_states), jnp.float32)

    raw_params = init_params(k_p, num_states, hdim=100)
    w1p, w2p, misc = pack_params(*raw_params)

    out = vnetwork_forward(states, w1p, w2p, misc)
    out = jax.block_until_ready(out)

    ref = vnetwork_ref(states, *raw_params)
    assert out.shape == (batch, 1), out.shape
    # bf16 activation/weight stream -> loosened tolerance vs the f32 reference.
    max_err = float(jnp.max(jnp.abs(out - ref)))
    assert jnp.allclose(out, ref, atol=3e-2, rtol=3e-2), (
        f"mismatch vs reference, max abs err {max_err}")

    print("KERNEL_OK")
</pallas_src>

<mosaic_0001>
module attributes {stable_mosaic.version = 11 : i64} {
  func.func @vnet_kernel(%arg0: i32, %arg1: memref<8x32xbf16, #tpu.memory_space<vmem>>, %arg2: memref<32x128xbf16, #tpu.memory_space<vmem>>, %arg3: memref<128x128xbf16, #tpu.memory_space<vmem>>, %arg4: memref<4x128xf32, #tpu.memory_space<vmem>>, %arg5: memref<8x1xf32, #tpu.memory_space<vmem>>) attributes {dimension_semantics = [#tpu.dimension_semantics<parallel>], iteration_bounds = array<i64: 1>, scalar_prefetch = 0 : i64, scratch_operands = 0 : i64, tpu.core_type = #tpu.core_type<tc>, window_params = [{transform_indices = @transform_0, window_bounds = array<i64: 8, 32>}, {pipeline_mode = #tpu.pipeline_mode<synchronous>, transform_indices = @transform_1, window_bounds = array<i64: 32, 128>}, {pipeline_mode = #tpu.pipeline_mode<synchronous>, transform_indices = @transform_2, window_bounds = array<i64: 128, 128>}, {pipeline_mode = #tpu.pipeline_mode<synchronous>, transform_indices = @transform_3, window_bounds = array<i64: 4, 128>}, {transform_indices = @transform_4, window_bounds = array<i64: 8, 1>}]} {
    %c0 = arith.constant 0 : index
    %c0_0 = arith.constant 0 : index
    %0 = vector.load %arg1[%c0, %c0_0] : memref<8x32xbf16, #tpu.memory_space<vmem>>, vector<8x32xbf16>
    %c0_1 = arith.constant 0 : index
    %c0_2 = arith.constant 0 : index
    %1 = vector.load %arg4[%c0_1, %c0_2] : memref<4x128xf32, #tpu.memory_space<vmem>>, vector<1x128xf32>
    %c1 = arith.constant 1 : index
    %c0_3 = arith.constant 0 : index
    %2 = vector.load %arg4[%c1, %c0_3] : memref<4x128xf32, #tpu.memory_space<vmem>>, vector<1x128xf32>
    %c2 = arith.constant 2 : index
    %c0_4 = arith.constant 0 : index
    %3 = vector.load %arg4[%c2, %c0_4] : memref<4x128xf32, #tpu.memory_space<vmem>>, vector<1x128xf32>
    %c3 = arith.constant 3 : index
    %c0_5 = arith.constant 0 : index
    %4 = vector.load %arg4[%c3, %c0_5] : memref<4x128xf32, #tpu.memory_space<vmem>>, vector<1x1xf32>
    %c0_6 = arith.constant 0 : index
    %c0_7 = arith.constant 0 : index
    %5 = vector.load %arg2[%c0_6, %c0_7] : memref<32x128xbf16, #tpu.memory_space<vmem>>, vector<32x128xbf16>
    %cst = arith.constant dense<0.000000e+00> : vector<8x128xf32>
    %6 = tpu.matmul %0, %5, %cst {dimension_numbers = #tpu.dot_dimension_numbers<[1], [0], [0], [1], [0, 0, 1, 1], [], []>} : vector<8x32xbf16>, vector<32x128xbf16>, vector<8x128xf32> -> vector<8x128xf32>
    %7 = vector.broadcast %1 : vector<1x128xf32> to vector<8x128xf32>
    %8 = arith.addf %6, %7 : vector<8x128xf32>
    %9 = math.tanh %8 : vector<8x128xf32>
    %10 = arith.truncf %9 : vector<8x128xf32> to vector<8x128xbf16>
    %c0_8 = arith.constant 0 : index
    %c0_9 = arith.constant 0 : index
    %11 = vector.load %arg3[%c0_8, %c0_9] : memref<128x128xbf16, #tpu.memory_space<vmem>>, vector<128x128xbf16>
    %cst_10 = arith.constant dense<0.000000e+00> : vector<8x128xf32>
    %12 = tpu.matmul %10, %11, %cst_10 {dimension_numbers = #tpu.dot_dimension_numbers<[1], [0], [0], [1], [0, 0, 1, 1], [], []>} : vector<8x128xbf16>, vector<128x128xbf16>, vector<8x128xf32> -> vector<8x128xf32>
    %13 = vector.broadcast %2 : vector<1x128xf32> to vector<8x128xf32>
    %14 = arith.addf %12, %13 : vector<8x128xf32>
    %15 = math.tanh %14 : vector<8x128xf32>
    %16 = vector.broadcast %3 : vector<1x128xf32> to vector<8x128xf32>
    %17 = arith.mulf %15, %16 : vector<8x128xf32>
    %cst_11 = arith.constant dense<0.000000e+00> : vector<8xf32>
    %18 = vector.multi_reduction <add>, %17, %cst_11 [1] : vector<8x128xf32> to vector<8xf32>
    %19 = vector.shape_cast %18 : vector<8xf32> to vector<8x1xf32>
    %20 = vector.broadcast %4 : vector<1x1xf32> to vector<8x1xf32>
    %21 = arith.addf %19, %20 : vector<8x1xf32>
    %c0_12 = arith.constant 0 : index
    %c0_13 = arith.constant 0 : index
    %22 = vector.load %arg5[%c0_12, %c0_13] : memref<8x1xf32, #tpu.memory_space<vmem>>, vector<8x1xf32>
    tpu.vector_store %arg5[%c0_12, %c0_13], %21 {strides = array<i32>} : memref<8x1xf32, #tpu.memory_space<vmem>>, vector<8x1xf32>,
    return
  }
  func.func @transform_0(%arg0: i32) -> (i32, i32) {
    %c0_i32 = arith.constant 0 : i32
    %c0_i32_0 = arith.constant 0 : i32
    return %arg0, %c0_i32 : i32, i32
  }
  func.func @transform_1(%arg0: i32) -> (i32, i32) {
    %c0_i32 = arith.constant 0 : i32
    %c0_i32_0 = arith.constant 0 : i32
    %c0_i32_1 = arith.constant 0 : i32
    return %c0_i32, %c0_i32_0 : i32, i32
  }
  func.func @transform_2(%arg0: i32) -> (i32, i32) {
    %c0_i32 = arith.constant 0 : i32
    %c0_i32_0 = arith.constant 0 : i32
    %c0_i32_1 = arith.constant 0 : i32
    return %c0_i32, %c0_i32_0 : i32, i32
  }
  func.func @transform_3(%arg0: i32) -> (i32, i32) {
    %c0_i32 = arith.constant 0 : i32
    %c0_i32_0 = arith.constant 0 : i32
    %c0_i32_1 = arith.constant 0 : i32
    return %c0_i32, %c0_i32_0 : i32, i32
  }
  func.func @transform_4(%arg0: i32) -> (i32, i32) {
    %c0_i32 = arith.constant 0 : i32
    %c0_i32_0 = arith.constant 0 : i32
    return %arg0, %c0_i32 : i32, i32
  }
}

</mosaic_0001>

<bundles_post_ra>
// kernel: tpu_custom_call.1
= control target key start
LH: loop header
LB: loop body
LE: loop exit
PB: predicated region body
PF: predicated region fallthrough
CT: control target
= control target key end

     0   :  { %9 = vsyncpa [#allocation3], 0  ;;  %s453_s0 = inlined_call_operand.hbm [shape: bf16[8,32], index: 0, kind: input, shape index: {}]   ;;  %s454_s1 = inlined_call_operand.hbm [shape: bf16[32,128], index: 1, kind: input, shape index: {}]   ;;  %s455_s2 = inlined_call_operand.hbm [shape: bf16[128,128], index: 2, kind: input, shape index: {}]   ;;  %s456_s3 = inlined_call_operand.vmem [shape: f32[4,128], index: 3, kind: input, shape index: {}]   ;;  %s457_s4 = inlined_call_operand.vmem [shape: f32[8,1], index: 4, kind: output, shape index: {}]  }
   0x1   :  { %10 = vsyncpa [#allocation5], 0  ;;  %s397_s15 = smov [#allocation4]  }
   0x2   :  { %s26_s16 = sshll.u32 %s397_s15, 4  ;;  %s27_s16 = int_to_ptr.vmem [resolvable:$true] %s26_s16 }
   0x3   :  { %s341_s17 = scalar_lea.vmem %s27_s16, 256  ;;  %p346_p1 = scmp.lt.s32.totalorder %s27_s16, %s27_s16 }
   0x4   :  { %p342_p0 = scmp.ne.s32.totalorder %s27_s16, %s341_s17  ;;  %p347_p2 = scmp.lt.s32.totalorder %s341_s17, %s341_s17 }
   0x6   :  { %p348_p3 = por %p347_p2, %p346_p1 }
   0x8   :  { %p349_p4 = pnand %p348_p3, %p342_p0 }
   0xa   :  { %352 = shalt.err (!%p349_p4)
}
   0xb   :  { %s398_s18 = smov 64   ;;  %s399_s19 = smov 4  }
   0xc   :  { %32 = dma.hbm_to_vmem [thread:$0]  %s454_s1, 256, %s27_s16, [#allocation5], %s398_s18, %s398_s18, %s399_s19  }
   0xd   :  { %s400_s22 = smov [#allocation2]   ;;  %s401_s24 = smov [#allocation6]  }
   0xe   :  { %s17_s23 = sshll.u32 %s400_s22, 4  ;;  %s38_s25 = sshll.u32 %s401_s24, 4  ;;  %s18_s23 = int_to_ptr.vmem [resolvable:$true] %s17_s23  ;;  %s39_s25 = int_to_ptr.vmem [resolvable:$true] %s38_s25 }
   0xf   :  { %s361_s26 = scalar_lea.vmem %s18_s23, 64  ;;  %p366_p6 = scmp.lt.s32.totalorder %s18_s23, %s18_s23 }
  0x10   :  { %p362_p5 = scmp.ne.s32.totalorder %s18_s23, %s361_s26  ;;  %p367_p7 = scmp.lt.s32.totalorder %s361_s26, %s361_s26 }
  0x12   :  { %p368_p8 = por %p367_p7, %p366_p6 }
  0x14   :  { %p369_p9 = pnand %p368_p8, %p362_p5 }
  0x16   :  { %372 = shalt.err (!%p369_p9)
}
  0x17   :  { %20 = dma.hbm_to_vmem [thread:$0]  %s453_s0, 64, %s18_s23, [#allocation3]  }
  0x18   :  { %s381_s29 = scalar_lea.vmem %s39_s25, 1024  ;;  %p386_p11 = scmp.lt.s32.totalorder %s39_s25, %s39_s25 }
  0x19   :  { %p382_p10 = scmp.ne.s32.totalorder %s39_s25, %s381_s29  ;;  %p387_p12 = scmp.lt.s32.totalorder %s381_s29, %s381_s29 }
  0x1b   :  { %p388_p13 = por %p387_p12, %p386_p11 }
  0x1d   :  { %p389_p0 = pnand %p388_p13, %p382_p10 }
  0x1f   :  { %392 = shalt.err (!%p389_p0)
}
  0x20   :  { %44 = dma.hbm_to_vmem [thread:$0]  %s455_s2, 1024, %s39_s25, [#allocation5], %s398_s18, %s398_s18, %s399_s19  }
  0x21   :  { %393 = dma.done.wait [#allocation3], 64  }
  0x22   :  { %394 = vsyncadd [#allocation3], 4294967232 }
  0x23   :  { %395 = dma.done.wait [#allocation5], 1280  }
  0x24   :  { %396 = vsyncadd [#allocation5], 4294966016  ;;  %v402_v0 = vmov 0.0   ;;  %vm403_vm0 = vmmov 0   ;;  %v319_v1 = vld [vmem:[#allocation4 + $0x8] sm:$0xff]   ;;  %v320_v2 = vld [vmem:[#allocation4] sm:$0xff]  }
  0x25   :  { %284 = vmatprep.subr.bf16.mxu0 %v402_v0  ;;  %288 = vmatprep.mubr.msk.bf16.mxu0 %vm403_vm0, %v402_v0  ;;  %v321_v3 = vld [vmem:[#allocation6 + $0x38] sm:$0xff]   ;;  %v57_v4 = vld [vmem:[#allocation2] sm:$0xf]  ;;  %vm82_vm1 = vcmask 261120   ;;  %v322_v5 = vld [vmem:[#allocation6 + $0x30] sm:$0xff]   ;;  %vm249_vm2 = vcmask 7168  }
  0x26   :  { %292 = vmatprep.subr.bf16.mxu1 %v402_v0  ;;  %308 = vmatprep.mubr.msk.bf16.mxu1 %vm403_vm0, %v402_v0  ;;  %v323_v6 = vld [vmem:[#allocation6 + $0x28] sm:$0xff]   ;;  %v324_v7 = vld [vmem:[#allocation6 + $0x20] sm:$0xff]   ;;  %v325_v8 = vld [vmem:[#allocation6 + $0x18] sm:$0xff]  }
  0x27   :  { %285 = vmatpush3.bf16.msra.mxu0 %v319_v1  ;;  %293 = vmatpush3.bf16.msra.mxu1 %v321_v3  ;;  %v326_v9 = vld [vmem:[#allocation6 + $0x10] sm:$0xff]   ;;  %v327_v10 = vld [vmem:[#allocation6 + $0x8] sm:$0xff]   ;;  %v328_v11 = vld [vmem:[#allocation6] sm:$0xff]  }
  0x28   :  { %286 = vmatprep.subr.bf16.mxu0 %v402_v0  ;;  %294 = vmatprep.subr.bf16.mxu1 %v402_v0  ;;  %v257_v12 = vld [vmem:[%s456_s3] ss:$0 sm:$0xff]  ;;  %v261_v20 = vld [vmem:[%s456_s3 + $0x1] ss:$0 sm:$0xff]  ;;  %v270_v26 = vld [vmem:[%s456_s3 + $0x2] ss:$0 sm:$0xff] }
  0x29   :  { %v271_v29 = vld [vmem:[%s456_s3 + $0x3] ss:$0 sm:$0xff] }
  0x2b   :  { %287 = vmatpush3.bf16.msra.mxu0 %v320_v2  ;;  %295 = vmatpush3.bf16.msra.mxu1 %v322_v5 }
  0x2c   :  { %296 = vmatprep.subr.bf16.mxu1 %v402_v0 }
  0x2e   :  { %289 = vmatmul.mubr.msk.bf16.vlgmr.msra.gmra.mxu0 %vm82_vm1, %v57_v4 }
  0x2f   :  { %297 = vmatpush3.bf16.msra.mxu1 %v323_v6 }
  0x30   :  { %298 = vmatprep.subr.bf16.mxu1 %v402_v0 }
  0x33   :  { %299 = vmatpush3.bf16.msra.mxu1 %v324_v7 }
  0x34   :  { %300 = vmatprep.subr.bf16.mxu1 %v402_v0 }
  0x37   :  { %301 = vmatpush3.bf16.msra.mxu1 %v325_v8 }
  0x38   :  { %302 = vmatprep.subr.bf16.mxu1 %v402_v0 }
  0x3b   :  { %303 = vmatpush3.bf16.msra.mxu1 %v326_v9 }
  0x3c   :  { %304 = vmatprep.subr.bf16.mxu1 %v402_v0 }
  0x3f   :  { %305 = vmatpush3.bf16.msra.mxu1 %v327_v10 }
  0x40   :  { %306 = vmatprep.subr.bf16.mxu1 %v402_v0 }
  0x43   :  { %307 = vmatpush3.bf16.msra.mxu1 %v328_v11 }
  0xee   :  { %v120_v13 = vpop.f32.mrf.mxu0 }
  0xef   :  { %v121_v14 = vadd.f32 %v257_v12, %v120_v13 }
  0xf0   :  { %v290_v15 = vpop.f32.mrf.mxu0 }
  0xf1   :  { %329 = vtanh.f32 %v121_v14 }
  0xf2   :  { %v123_v16 = vpop.f32.mrf.mxu0 }
  0xf4   :  { %v291_v17 = vpop.f32.mrf.mxu0 }
  0xfe   :  { %v330_v18 = vpop.eup %329 }
  0xff   :  { %v127_v19 = vpack.c.bf16 %v330_v18, %v330_v18 }
 0x101   :  { %309 = vmatmul.mubr.bf16.vlgmr.msra.gmra.mxu1 %v127_v19 }
 0x1c1   :  { %v230_v21 = vpop.f32.mrf.mxu1 }
 0x1c2   :  { %v231_v22 = vadd.f32 %v261_v20, %v230_v21 }
 0x1c3   :  { %v310_v23 = vpop.f32.mrf.mxu1 }
 0x1c4   :  { %331 = vtanh.f32 %v231_v22 }
 0x1c5   :  { %v233_v24 = vpop.f32.mrf.mxu1 }
 0x1c7   :  { %v311_v25 = vpop.f32.mrf.mxu1 }
 0x1d1   :  { %v332_v27 = vpop.eup %331 }
 0x1d2   :  { %v241_v28 = vmul.f32 %v332_v27, %v270_v26 }
 0x1d4   :  { %242 = vadd.xlane.f32.xlu0 %v241_v28 }
 0x25d   :  { %v243_v30 = vpop.xlane.xlu0 %242 }
 0x25e   :  { %v248_v31 = vadd.f32 %v271_v29, %v243_v30 }
 0x260   :  { %250 = vst.msk [vmem:[%s457_s4] sm:$0xff] %vm249_vm2, %v248_v31 }
 0x261   :  { %255 = vsyncpa [#allocation3], 1 }
 0x262   :  { %256 = vsyncpa [#allocation5], 1 }

</bundles_post_ra>
